<compile_context>
chip_gen: v7x
topology: tpu7x:2x2x1
jax: 0.10.0
libtpu: 0.0.40
codegen_flags: <defaults>
</compile_context>

<pallas_src>
import math
import functools

import numpy as np
import jax
import jax.numpy as jnp
from jax.experimental import pallas as pl
from jax.experimental.pallas import tpu as pltpu

BF16 = jnp.bfloat16
F32 = jnp.float32
VMEM_LIMIT = 32 * 1024 * 1024        # explicit scoped-VMEM limit (fits all gens)


def _round_up(x, m):
    return ((x + m - 1) // m) * m


def _pad_rows(a, rows):
    pad = rows - a.shape[0]
    if pad <= 0:
        return a
    return jnp.pad(a, ((0, pad), (0, 0)))


# --------------------------------------------------------------------------
# GRUCell with hx = None (zeros): gi = x @ Wih^T + bih, gh = bhh only.
# --------------------------------------------------------------------------
def _gru_h0_kernel(x_ref, wx_ref, bx_ref, bh_ref, out_ref):
    d = out_ref.shape[-1]
    x = x_ref[...].astype(BF16)
    gi = jnp.dot(x, wx_ref[...], preferred_element_type=F32) + bx_ref[...]
    bh = bh_ref[...]
    r = jax.nn.sigmoid(gi[:, :d] + bh[:, :d])
    z = jax.nn.sigmoid(gi[:, d:2 * d] + bh[:, d:2 * d])
    n = jnp.tanh(gi[:, 2 * d:] + r * bh[:, 2 * d:])
    out_ref[...] = (1.0 - z) * n


def gru_cell_h0(x, p, *, tile=128):
    rows, d = x.shape
    assert rows % tile == 0
    weights = (p['wx'], p['bx'], p['bh'])
    return pl.pallas_call(
        _gru_h0_kernel,
        grid=(rows // tile,),
        out_shape=jax.ShapeDtypeStruct((rows, d), F32),
        in_specs=[pl.BlockSpec((tile, d), lambda i: (i, 0))]
                 + [pl.BlockSpec(w.shape, lambda i: (0, 0)) for w in weights],
        out_specs=pl.BlockSpec((tile, d), lambda i: (i, 0)),
        compiler_params=pltpu.CompilerParams(dimension_semantics=("parallel",),
                                             vmem_limit_bytes=VMEM_LIMIT),
    )(x, *weights)


# --------------------------------------------------------------------------
# MSG_FAN.message (nn_edge MLP + FAN attention, heads kept on the lane axis
# via block-diagonal nn_att weights) fused with the edge GRU.
# --------------------------------------------------------------------------
def _message_edge_kernel(x_i_ref, ef_ref, x_j_ref,
                         w1a_ref, w1b_ref, w1c_ref, b1_ref, w2_ref, b2_ref,
                         wq_ref, bq_ref, wk_ref, bk_ref, wv_ref, bv_ref,
                         a1q_ref, a1k_ref, a1b_ref, bns_ref, bnb_ref,
                         a2_ref, a2b_ref,
                         ewx_ref, ewh_ref, ebx_ref, ebh_ref,
                         edge_out_ref, value_out_ref, prob_out_ref,
                         *, num_heads, dep, inv_temperature, relu_input):
    x_i = x_i_ref[...]                       # bf16
    ef32 = ef_ref[...]                       # f32 (edge GRU hidden state)
    ef = ef32.astype(BF16)
    x_j = x_j_ref[...]                       # bf16

    # nn_edge: Linear(cat[x_i, edge, x_j]) -> ReLU -> Linear (concat folded
    # into three matmuls on the split weight).
    h1 = (jnp.dot(x_i, w1a_ref[...], preferred_element_type=F32)
          + jnp.dot(ef, w1b_ref[...], preferred_element_type=F32)
          + jnp.dot(x_j, w1c_ref[...], preferred_element_type=F32)
          + b1_ref[...])
    h1 = jnp.maximum(h1, 0.0).astype(BF16)
    edge_msg = jnp.dot(h1, w2_ref[...], preferred_element_type=F32) + b2_ref[...]

    # FAN attention projections (head-blocked lane layout)
    q = (jnp.dot(x_i, wq_ref[...], preferred_element_type=F32) + bq_ref[...]).astype(BF16)
    k = (jnp.dot(ef, wk_ref[...], preferred_element_type=F32) + bk_ref[...]).astype(BF16)
    v = jnp.dot(x_j, wv_ref[...], preferred_element_type=F32) + bv_ref[...]

    # nn_att: Conv1d(k=1) -> BatchNorm1d(eval) -> ReLU -> Conv1d(k=1), applied
    # per head via block-diagonal weights (heads stay on the lane axis).
    t = (jnp.dot(q, a1q_ref[...], preferred_element_type=F32)
         + jnp.dot(k, a1k_ref[...], preferred_element_type=F32)
         + a1b_ref[...])
    t = jnp.maximum(t * bns_ref[...] + bnb_ref[...], 0.0).astype(BF16)
    att = (jnp.dot(t, a2_ref[...], preferred_element_type=F32) + a2b_ref[...])
    att = att * inv_temperature

    # per-head softmax over the dep channel block (f32, exact division)
    probs = []
    for h in range(num_heads):               # static, tiny
        a_h = att[:, h * dep:(h + 1) * dep]
        a_h = a_h - jnp.max(a_h, axis=1, keepdims=True)
        e_h = jnp.exp(a_h)
        probs.append(e_h / jnp.sum(e_h, axis=1, keepdims=True))
    prob = jnp.concatenate(probs, axis=1)    # [te, H*dep] head-blocked
    prob_out_ref[...] = prob
    value_out_ref[...] = (prob * v).astype(BF16)   # dense, lane-aligned store

    # edge GRU fused in (relu on the message when the layer asks for it)
    xg = edge_msg
    if relu_input:
        xg = jnp.maximum(xg, 0.0)
    de = ef32.shape[-1]
    gi = jnp.dot(xg.astype(BF16), ewx_ref[...], preferred_element_type=F32) + ebx_ref[...]
    gh = jnp.dot(ef, ewh_ref[...], preferred_element_type=F32) + ebh_ref[...]
    r = jax.nn.sigmoid(gi[:, :de] + gh[:, :de])
    z = jax.nn.sigmoid(gi[:, de:2 * de] + gh[:, de:2 * de])
    n = jnp.tanh(gi[:, 2 * de:] + r * gh[:, 2 * de:])
    edge_out_ref[...] = (1.0 - z) * n + z * ef32


def msg_fan_edge_gru(x_i, ef, x_j, gp, egru, *, relu_input, tile=128):
    E_pad, dn = x_i.shape
    de = ef.shape[1]
    H, dep, da = gp['num_heads'], gp['dep'], gp['dim_atten']
    assert E_pad % tile == 0
    wnames = ('w1a', 'w1b', 'w1c', 'b1', 'w2', 'b2',
              'wq', 'bq', 'wk', 'bk', 'wv', 'bv',
              'a1q', 'a1k', 'a1b', 'bn_s', 'bn_b', 'a2', 'a2b')
    weights = [gp[n] for n in wnames] + [egru['wx'], egru['wh'], egru['bx'], egru['bh']]
    kern = functools.partial(_message_edge_kernel, num_heads=H, dep=dep,
                             inv_temperature=1.0 / gp['temperature'],
                             relu_input=relu_input)
    return pl.pallas_call(
        kern,
        grid=(E_pad // tile,),
        out_shape=(jax.ShapeDtypeStruct((E_pad, de), F32),
                   jax.ShapeDtypeStruct((E_pad, da), BF16),
                   jax.ShapeDtypeStruct((E_pad, H * dep), F32)),
        in_specs=[pl.BlockSpec((tile, dn), lambda i: (i, 0)),
                  pl.BlockSpec((tile, de), lambda i: (i, 0)),
                  pl.BlockSpec((tile, dn), lambda i: (i, 0))]
                 + [pl.BlockSpec(w.shape, lambda i: (0, 0)) for w in weights],
        out_specs=(pl.BlockSpec((tile, de), lambda i: (i, 0)),
                   pl.BlockSpec((tile, da), lambda i: (i, 0)),
                   pl.BlockSpec((tile, H * dep), lambda i: (i, 0))),
        compiler_params=pltpu.CompilerParams(dimension_semantics=("parallel",),
                                             vmem_limit_bytes=VMEM_LIMIT),
    )(x_i, ef, x_j, *weights)


# --------------------------------------------------------------------------
# Fused aggregate (scatter reduce='max' onto edge_index[0]) + update_node MLP
# + node GRU.  Edges are pre-sorted by destination; per-node-tile first edge
# block and block counts arrive via scalar prefetch.  The scatter-max is
# vectorized: 128//da node rows are processed per reduce pass via a
# lane-replicated membership compare, accumulated locally, and the VMEM
# accumulator is updated with one dense maximum per edge block.
# --------------------------------------------------------------------------
def _aggr_update_gru_kernel(eblk_ref, nblk_ref, idx_ref, val_ref, x_ref,
                            ua_ref, ub_ref, ub1_ref, u2_ref, ub2_ref,
                            nwx_ref, nwh_ref, nbx_ref, nbh_ref,
                            out_ref, acc_ref, *, tn, da, reps, relu_input):
    del eblk_ref                                     # only used by index_maps
    i = pl.program_id(0)
    j = pl.program_id(1)
    neg = jnp.float32(-jnp.inf)
    groups = tn // reps
    lane_w = reps * da

    @pl.when(j == 0)
    def _():
        acc_ref[...] = jnp.full(acc_ref.shape, neg, acc_ref.dtype)

    # ---- scatter(reduce='max') for this (node-tile, edge-block) pair ------
    @pl.when(j < nblk_ref[i])
    def _():
        idx = idx_ref[...]                           # [te, 1] int32 (src-sorted)
        val = val_ref[...].astype(F32)               # [te, da]
        te = val.shape[0]
        # lane block r of packed row g corresponds to node row r*groups + g
        val_rep = jnp.concatenate([val] * reps, axis=1)          # [te, reps*da]
        lane_row = jax.lax.broadcasted_iota(jnp.int32, (te, lane_w), 1) // da
        rel = idx - (lane_row * groups + i * tn)     # == g iff edge hits that row
        rows = []
        for g in range(groups):                      # static unroll, 1 reduce per pass
            m = rel == g
            red = jnp.max(jnp.where(m, val_rep, neg), axis=0, keepdims=True)
            rows.append(red)                         # [1, reps*da]
        new = jnp.concatenate(rows, axis=0)          # [groups, reps*da] packed
        acc_ref[...] = jnp.maximum(acc_ref[...], new)

    # ---- last edge block: unpack, update_node MLP, node GRU ---------------
    @pl.when(j == pl.num_programs(1) - 1)
    def _():
        acc = acc_ref[...]
        aggr = jnp.concatenate([acc[:, r * da:(r + 1) * da] for r in range(reps)],
                               axis=0)               # [tn, da] in node-row order
        aggr = jnp.where(aggr == neg, 0.0, aggr)     # untouched rows -> 0 (torch_scatter)
        x32 = x_ref[...]                             # f32 node features (GRU hidden)
        x = x32.astype(BF16)
        h = (jnp.dot(x, ua_ref[...], preferred_element_type=F32)
             + jnp.dot(aggr.astype(BF16), ub_ref[...], preferred_element_type=F32)
             + ub1_ref[...])
        h = jnp.maximum(h, 0.0).astype(BF16)
        node_msg = jnp.dot(h, u2_ref[...], preferred_element_type=F32) + ub2_ref[...]
        if relu_input:
            node_msg = jnp.maximum(node_msg, 0.0)
        dn = x32.shape[-1]
        gi = (jnp.dot(node_msg.astype(BF16), nwx_ref[...], preferred_element_type=F32)
              + nbx_ref[...])
        gh = jnp.dot(x, nwh_ref[...], preferred_element_type=F32) + nbh_ref[...]
        r = jax.nn.sigmoid(gi[:, :dn] + gh[:, :dn])
        z = jax.nn.sigmoid(gi[:, dn:2 * dn] + gh[:, dn:2 * dn])
        n = jnp.tanh(gi[:, 2 * dn:] + r * gh[:, 2 * dn:])
        out_ref[...] = (1.0 - z) * n + z * x32


def aggregate_update_gru(values_sorted, idx_sorted, node_f, eblk_first, nblk,
                         max_blocks, gp, ngru, *, relu_input, tn=128, te=128):
    E_pad, da = values_sorted.shape
    N_pad, dn = node_f.shape
    assert E_pad % te == 0 and N_pad % tn == 0
    n_eblk = E_pad // te
    n_ntile = N_pad // tn
    reps = 128 // da if (da <= 128 and 128 % da == 0) else 1
    assert tn % reps == 0
    weights = (gp['ua'], gp['ub'], gp['ub1'], gp['u2'], gp['ub2'],
               ngru['wx'], ngru['wh'], ngru['bx'], ngru['bh'])

    def edge_map(i, j, eb, nb):
        # revisits of the clamped last block are skipped by the nblk guard,
        # and harmless anyway (max is idempotent).
        return (jnp.minimum(eb[i] + j, n_eblk - 1), 0)

    def node_map(i, j, eb, nb):
        return (i, 0)

    grid_spec = pltpu.PrefetchScalarGridSpec(
        num_scalar_prefetch=2,
        grid=(n_ntile, max_blocks),
        in_specs=[pl.BlockSpec((te, 1), edge_map),
                  pl.BlockSpec((te, da), edge_map),
                  pl.BlockSpec((tn, dn), node_map)]
                 + [pl.BlockSpec(w.shape, lambda i, j, eb, nb: (0, 0)) for w in weights],
        out_specs=pl.BlockSpec((tn, dn), node_map),
        scratch_shapes=[pltpu.VMEM((tn // reps, reps * da), F32)])

    kern = functools.partial(_aggr_update_gru_kernel, tn=tn, da=da, reps=reps,
                             relu_input=relu_input)
    return pl.pallas_call(
        kern,
        grid_spec=grid_spec,
        out_shape=jax.ShapeDtypeStruct((N_pad, dn), F32),
        compiler_params=pltpu.CompilerParams(
            dimension_semantics=("parallel", "arbitrary"),
            vmem_limit_bytes=VMEM_LIMIT),
    )(eblk_first, nblk, idx_sorted, values_sorted, node_f, *weights)


# --------------------------------------------------------------------------
# Deterministic parameter construction (PyTorch-style uniform init)
# --------------------------------------------------------------------------
def _uniform(key, shape, bound):
    return jax.random.uniform(key, shape, jnp.float32, -bound, bound)


def _linear(key, din, dout):
    k1, k2 = jax.random.split(key)
    b = 1.0 / math.sqrt(din)
    return _uniform(k1, (dout, din), b), _uniform(k2, (dout,), b)


def _head_perm(dph, num_heads):
    # head-blocked position (h*dph + c) <- interleaved channel (c*H + h)
    return jnp.array([c * num_heads + h
                      for h in range(num_heads) for c in range(dph)], dtype=jnp.int32)


def _block_diag(block, num_heads):
    r, c = block.shape
    out = jnp.zeros((num_heads * r, num_heads * c), jnp.float32)
    for h in range(num_heads):
        out = out.at[h * r:(h + 1) * r, h * c:(h + 1) * c].set(block)
    return out


def make_gru_params(key, d):
    k1, k2, k3, k4 = jax.random.split(key, 4)
    b = 1.0 / math.sqrt(d)
    wih = _uniform(k1, (3 * d, d), b)               # torch weight_ih (rows r|z|n)
    whh = _uniform(k2, (3 * d, d), b)
    bih = _uniform(k3, (3 * d,), b)
    bhh = _uniform(k4, (3 * d,), b)
    return dict(wx=wih.T.astype(BF16), wh=whh.T.astype(BF16),
                bx=bih[None, :].astype(F32), bh=bhh[None, :].astype(F32))


def make_msg_fan_params(key, dim_node, dim_edge, dim_atten, num_heads):
    assert dim_node % num_heads == 0 and dim_edge % num_heads == 0
    assert dim_atten % num_heads == 0
    assert dim_edge == dim_atten, "prob.reshape_as(x_j) needs dim_edge == dim_atten"
    dnp, dep, dvp = dim_node // num_heads, dim_edge // num_heads, dim_atten // num_heads
    ks = jax.random.split(key, 9)
    # nn_edge = build_mlp([2*dn+de, dn+de, de], on_last=False)
    w1, b1 = _linear(ks[0], 2 * dim_node + dim_edge, dim_node + dim_edge)
    w2, b2 = _linear(ks[1], dim_node + dim_edge, dim_edge)
    # proj_q / proj_k / proj_v
    wq, bq = _linear(ks[2], dim_node, dim_node)
    wk, bk = _linear(ks[3], dim_edge, dim_edge)
    wv, bv = _linear(ks[4], dim_node, dim_atten)
    # nn_att = MLP([dnp+dep, dnp+dep, dep]) : Conv1d(k=1) -> BN -> ReLU -> Conv1d(k=1)
    a1, a1b = _linear(ks[5], dnp + dep, dnp + dep)
    a2, a2b = _linear(ks[6], dnp + dep, dep)
    # update_node = build_mlp([dn+da, dn+da, dn], on_last=False)
    u1, u1b = _linear(ks[7], dim_node + dim_atten, dim_node + dim_atten)
    u2, u2b = _linear(ks[8], dim_node + dim_atten, dim_node)

    pq = _head_perm(dnp, num_heads)
    pk = _head_perm(dep, num_heads)
    pv = _head_perm(dvp, num_heads)
    w1t, u1t = w1.T, u1.T
    bf = lambda a: a.astype(BF16)
    eps = 1e-5
    return dict(
        num_heads=num_heads, dnp=dnp, dep=dep, dvp=dvp, dim_atten=dim_atten,
        temperature=float(math.sqrt(dep)),
        w1a=bf(w1t[:dim_node]), w1b=bf(w1t[dim_node:dim_node + dim_edge]),
        w1c=bf(w1t[dim_node + dim_edge:]), b1=b1[None, :],
        w2=bf(w2.T), b2=b2[None, :],
        wq=bf(wq.T[:, pq]), bq=bq[pq][None, :],
        wk=bf(wk.T[:, pk]), bk=bk[pk][None, :],
        wv=bf(wv.T[:, pv]), bv=bv[pv][None, :],
        # nn_att as block-diagonal per-head weights (heads stay on the lane axis)
        a1q=bf(_block_diag(a1.T[:dnp, :], num_heads)),
        a1k=bf(_block_diag(a1.T[dnp:, :], num_heads)),
        a1b=jnp.tile(a1b[None, :], (1, num_heads)),
        # TODO(synk): BatchNorm1d evaluated with fresh eval stats (mean=0, var=1).
        bn_s=jnp.full((1, num_heads * (dnp + dep)), 1.0 / math.sqrt(1.0 + eps), F32),
        bn_b=jnp.zeros((1, num_heads * (dnp + dep)), F32),
        a2=bf(_block_diag(a2.T, num_heads)),
        a2b=jnp.tile(a2b[None, :], (1, num_heads)),
        # inverse head permutation folded into update_node's aggr weight rows
        ua=bf(u1t[:dim_node]), ub=bf(u1t[dim_node:][pv, :]), ub1=u1b[None, :],
        u2=bf(u2.T), ub2=u2b[None, :],
    )


# --------------------------------------------------------------------------
# Host-side graph preparation (once per topology) + FAN_GRU forward
# --------------------------------------------------------------------------
def prepare_graph(edge_index, num_nodes, *, row_tile=128, tn=128, te=128):
    ei = np.asarray(jax.device_get(edge_index)).astype(np.int64)
    E = int(ei.shape[1])
    N_pad = _round_up(max(int(num_nodes), 1), max(row_tile, tn))
    E_pad = _round_up(max(E, 1), max(row_tile, te))
    order = np.argsort(ei[0], kind='stable')
    inv_order = np.argsort(order)
    src_s, dst_s = ei[0][order], ei[1][order]
    src_pad = np.concatenate([src_s, np.zeros(E_pad - E, np.int64)]).astype(np.int32)
    dst_pad = np.concatenate([dst_s, np.zeros(E_pad - E, np.int64)]).astype(np.int32)
    # sentinel N_pad for padded edges: never matches any node row.
    scat_idx = np.concatenate([src_s, np.full(E_pad - E, N_pad, np.int64)]).astype(np.int32)
    n_eblk = E_pad // te
    n_ntile = N_pad // tn
    tile_lo = np.arange(n_ntile, dtype=np.int64) * tn
    starts = np.searchsorted(scat_idx, tile_lo, side='left')
    ends = np.searchsorted(scat_idx, tile_lo + tn, side='left')
    counts = ends - starts
    first_blk = np.minimum(starts // te, n_eblk - 1)
    last_blk = np.minimum(np.maximum(ends - 1, starts) // te, n_eblk - 1)
    nblk = np.where(counts > 0, last_blk - first_blk + 1, 0).astype(np.int32)
    max_blocks = max(int(nblk.max()), 1)
    return dict(
        N=int(num_nodes), E=E, N_pad=int(N_pad), E_pad=int(E_pad),
        max_blocks=max_blocks,
        src=jnp.asarray(src_pad), dst=jnp.asarray(dst_pad),
        scat_idx=jnp.asarray(scat_idx)[:, None],
        order=jnp.asarray(order.astype(np.int32)),
        inv_order=jnp.asarray(inv_order.astype(np.int32)),
        eblk_first=jnp.asarray(first_blk.astype(np.int32)),
        nblk=jnp.asarray(nblk))


def fan_gru_forward(node_x, edge_x, graph, params, *, row_tile=128, tn=128, te=128):
    num_layers = params['num_layers']
    N, E = graph['N'], graph['E']
    N_pad, E_pad = graph['N_pad'], graph['E_pad']

    node_xp = _pad_rows(node_x, N_pad)
    # edge tensors are kept src-sorted for the whole forward pass
    edge_xp = _pad_rows(jnp.take(edge_x, graph['order'], axis=0), E_pad)

    # initial GRU pass with hx = None (zeros): specialized h=0 kernels
    node_f = gru_cell_h0(node_xp, params['node_gru'], tile=row_tile)
    edge_f = gru_cell_h0(edge_xp, params['edge_gru'], tile=row_tile)

    probs = []
    for i in range(num_layers):
        gp = params['gconvs'][i]
        H, dep = gp['num_heads'], gp['dep']
        apply_relu = (i < num_layers - 1) or (num_layers == 1)
        # MessagePassing flow='target_to_source': x_i = x[edge_index[0]], x_j = x[edge_index[1]]
        # TODO(synk): x_i / x_j gathers are XLA glue (bf16), not fused in-kernel DMA gathers.
        node_bf = node_f.astype(BF16)
        x_i = jnp.take(node_bf, graph['src'], axis=0)
        x_j = jnp.take(node_bf, graph['dst'], axis=0)
        # fused: nn_edge + FAN attention + edge GRU (edge_f is both input and hidden)
        edge_f_new, value, prob = msg_fan_edge_gru(
            x_i, edge_f, x_j, gp, params['edge_gru'],
            relu_input=apply_relu, tile=row_tile)
        # fused: scatter(max onto edge_index[0]) + update_node MLP + node GRU
        # TODO(synk): attention / feature dropout run in eval mode (identity).
        node_f = aggregate_update_gru(
            value, graph['scat_idx'], node_f, graph['eblk_first'], graph['nblk'],
            graph['max_blocks'], gp, params['node_gru'],
            relu_input=apply_relu, tn=tn, te=te)
        edge_f = edge_f_new
        # prob back to PyTorch layout [E, dim_edge_proj, H], original edge order
        prob_e = jnp.take(prob[:E], graph['inv_order'], axis=0)
        probs.append(prob_e.reshape(E, H, dep).transpose(0, 2, 1))

    node_out = node_f[:N]
    edge_out = jnp.take(edge_f[:E], graph['inv_order'], axis=0)
    return node_out, edge_out, probs


# --------------------------------------------------------------------------
if __name__ == "__main__":
    key = jax.random.PRNGKey(0)
    dim_node = dim_edge = dim_atten = 32
    num_heads = 2
    num_layers = 2
    N, E = 8, 16

    k_node, k_edge, k_ngru, k_egru, k_g = jax.random.split(key, 5)
    node_x = jax.random.normal(k_node, (N, dim_node), jnp.float32)
    edge_x = jax.random.normal(k_edge, (E, dim_edge), jnp.float32)
    src = jnp.arange(E, dtype=jnp.int32) % N
    dst = (jnp.arange(E, dtype=jnp.int32) * 3 + 1) % N
    edge_index = jnp.stack([src, dst], axis=0)                # [2, E]

    gkeys = jax.random.split(k_g, num_layers)
    params = dict(
        num_layers=num_layers,
        node_gru=make_gru_params(k_ngru, dim_node),
        edge_gru=make_gru_params(k_egru, dim_edge),
        gconvs=[make_msg_fan_params(gkeys[i], dim_node, dim_edge, dim_atten, num_heads)
                for i in range(num_layers)],
    )

    graph = prepare_graph(edge_index, N)          # host-side, once per topology
    node_f, edge_f, probs = fan_gru_forward(node_x, edge_x, graph, params)
    jax.block_until_ready((node_f, edge_f, probs))

    assert node_f.shape == (N, dim_node)
    assert edge_f.shape == (E, dim_edge)
    assert len(probs) == num_layers
    assert probs[0].shape == (E, dim_edge // num_heads, num_heads)
    assert bool(jnp.all(jnp.isfinite(node_f))) and bool(jnp.all(jnp.isfinite(edge_f)))
    # softmax over the channel dim sums to ~1 for every (edge, head)
    assert bool(jnp.all(jnp.abs(jnp.sum(probs[0], axis=1) - 1.0) < 1e-3))
    print("KERNEL_OK")
</pallas_src>

<mosaic_0001>
module attributes {stable_mosaic.version = 11 : i64} {
  func.func @_gru_h0_kernel(%arg0: i32, %arg1: memref<128x32xf32, #tpu.memory_space<vmem>>, %arg2: memref<32x96xbf16, #tpu.memory_space<vmem>>, %arg3: memref<1x96xf32, #tpu.memory_space<vmem>>, %arg4: memref<1x96xf32, #tpu.memory_space<vmem>>, %arg5: memref<128x32xf32, #tpu.memory_space<vmem>>) attributes {dimension_semantics = [#tpu.dimension_semantics<parallel>], iteration_bounds = array<i64: 1>, scalar_prefetch = 0 : i64, scratch_operands = 0 : i64, tpu.core_type = #tpu.core_type<tc>, window_params = [{transform_indices = @transform_0, window_bounds = array<i64: 128, 32>}, {pipeline_mode = #tpu.pipeline_mode<synchronous>, transform_indices = @transform_1, window_bounds = array<i64: 32, 96>}, {pipeline_mode = #tpu.pipeline_mode<synchronous>, transform_indices = @transform_2, window_bounds = array<i64: 1, 96>}, {pipeline_mode = #tpu.pipeline_mode<synchronous>, transform_indices = @transform_3, window_bounds = array<i64: 1, 96>}, {transform_indices = @transform_4, window_bounds = array<i64: 128, 32>}]} {
    %c0 = arith.constant 0 : index
    %c0_0 = arith.constant 0 : index
    %0 = vector.load %arg1[%c0, %c0_0] : memref<128x32xf32, #tpu.memory_space<vmem>>, vector<128x32xf32>
    %1 = arith.truncf %0 : vector<128x32xf32> to vector<128x32xbf16>
    %c0_1 = arith.constant 0 : index
    %c0_2 = arith.constant 0 : index
    %2 = vector.load %arg2[%c0_1, %c0_2] : memref<32x96xbf16, #tpu.memory_space<vmem>>, vector<32x96xbf16>
    %cst = arith.constant dense<0.000000e+00> : vector<128x96xf32>
    %3 = tpu.matmul %1, %2, %cst {dimension_numbers = #tpu.dot_dimension_numbers<[1], [0], [0], [1], [0, 0, 1, 1], [], []>} : vector<128x32xbf16>, vector<32x96xbf16>, vector<128x96xf32> -> vector<128x96xf32>
    %c0_3 = arith.constant 0 : index
    %c0_4 = arith.constant 0 : index
    %4 = vector.load %arg3[%c0_3, %c0_4] : memref<1x96xf32, #tpu.memory_space<vmem>>, vector<1x96xf32>
    %5 = vector.broadcast %4 : vector<1x96xf32> to vector<128x96xf32>
    %6 = arith.addf %3, %5 : vector<128x96xf32>
    %c0_5 = arith.constant 0 : index
    %c0_6 = arith.constant 0 : index
    %7 = vector.load %arg4[%c0_5, %c0_6] : memref<1x96xf32, #tpu.memory_space<vmem>>, vector<1x96xf32>
    %8 = vector.extract_strided_slice %6 {offsets = [0, 0], sizes = [128, 32], strides = [1, 1]} : vector<128x96xf32> to vector<128x32xf32>
    %9 = vector.extract_strided_slice %7 {offsets = [0, 0], sizes = [1, 32], strides = [1, 1]} : vector<1x96xf32> to vector<1x32xf32>
    %10 = vector.broadcast %9 : vector<1x32xf32> to vector<128x32xf32>
    %11 = arith.addf %8, %10 : vector<128x32xf32>
    %12 = arith.negf %11 : vector<128x32xf32>
    %13 = math.exp %12 : vector<128x32xf32>
    %cst_7 = arith.constant 1.000000e+00 : f32
    %14 = vector.broadcast %cst_7 : f32 to vector<128x32xf32>
    %15 = arith.addf %14, %13 : vector<128x32xf32>
    %16 = arith.divf %14, %15 : vector<128x32xf32>
    %17 = vector.extract_strided_slice %6 {offsets = [0, 32], sizes = [128, 32], strides = [1, 1]} : vector<128x96xf32> to vector<128x32xf32>
    %18 = vector.extract_strided_slice %7 {offsets = [0, 32], sizes = [1, 32], strides = [1, 1]} : vector<1x96xf32> to vector<1x32xf32>
    %19 = vector.broadcast %18 : vector<1x32xf32> to vector<128x32xf32>
    %20 = arith.addf %17, %19 : vector<128x32xf32>
    %21 = arith.negf %20 : vector<128x32xf32>
    %22 = math.exp %21 : vector<128x32xf32>
    %cst_8 = arith.constant 1.000000e+00 : f32
    %23 = vector.broadcast %cst_8 : f32 to vector<128x32xf32>
    %24 = arith.addf %23, %22 : vector<128x32xf32>
    %25 = arith.divf %23, %24 : vector<128x32xf32>
    %26 = vector.extract_strided_slice %6 {offsets = [0, 64], sizes = [128, 32], strides = [1, 1]} : vector<128x96xf32> to vector<128x32xf32>
    %27 = vector.extract_strided_slice %7 {offsets = [0, 64], sizes = [1, 32], strides = [1, 1]} : vector<1x96xf32> to vector<1x32xf32>
    %28 = vector.broadcast %27 : vector<1x32xf32> to vector<128x32xf32>
    %29 = arith.mulf %16, %28 : vector<128x32xf32>
    %30 = arith.addf %26, %29 : vector<128x32xf32>
    %31 = math.tanh %30 : vector<128x32xf32>
    %cst_9 = arith.constant 1.000000e+00 : f32
    %32 = vector.broadcast %cst_9 : f32 to vector<128x32xf32>
    %33 = arith.subf %32, %25 : vector<128x32xf32>
    %34 = arith.mulf %33, %31 : vector<128x32xf32>
    %c0_10 = arith.constant 0 : index
    %c0_11 = arith.constant 0 : index
    %35 = vector.load %arg5[%c0_10, %c0_11] : memref<128x32xf32, #tpu.memory_space<vmem>>, vector<128x32xf32>
    tpu.vector_store %arg5[%c0_10, %c0_11], %34 {strides = array<i32>} : memref<128x32xf32, #tpu.memory_space<vmem>>, vector<128x32xf32>,
    return
  }
  func.func @transform_0(%arg0: i32) -> (i32, i32) {
    %c0_i32 = arith.constant 0 : i32
    %c0_i32_0 = arith.constant 0 : i32
    return %arg0, %c0_i32 : i32, i32
  }
  func.func @transform_1(%arg0: i32) -> (i32, i32) {
    %c0_i32 = arith.constant 0 : i32
    %c0_i32_0 = arith.constant 0 : i32
    %c0_i32_1 = arith.constant 0 : i32
    return %c0_i32, %c0_i32_0 : i32, i32
  }
  func.func @transform_2(%arg0: i32) -> (i32, i32) {
    %c0_i32 = arith.constant 0 : i32
    %c0_i32_0 = arith.constant 0 : i32
    %c0_i32_1 = arith.constant 0 : i32
    return %c0_i32, %c0_i32_0 : i32, i32
  }
  func.func @transform_3(%arg0: i32) -> (i32, i32) {
    %c0_i32 = arith.constant 0 : i32
    %c0_i32_0 = arith.constant 0 : i32
    %c0_i32_1 = arith.constant 0 : i32
    return %c0_i32, %c0_i32_0 : i32, i32
  }
  func.func @transform_4(%arg0: i32) -> (i32, i32) {
    %c0_i32 = arith.constant 0 : i32
    %c0_i32_0 = arith.constant 0 : i32
    return %arg0, %c0_i32 : i32, i32
  }
}

</mosaic_0001>

<bundles_post_ra>
// kernel: tpu_custom_call.1
= control target key start
LH: loop header
LB: loop body
LE: loop exit
PB: predicated region body
PF: predicated region fallthrough
CT: control target
= control target key end

     0   :  { %vm65_vm0 = vcmask 261120   ;;  %s763_s18 = smov 64   ;;  %s1154_s1 = inlined_call_operand.vmem [shape: bf16[32,96], index: 1, kind: input, shape index: {}]   ;;  %s1155_s0 = inlined_call_operand.vmem [shape: f32[128,32], index: 0, kind: input, shape index: {}]   ;;  %s1156_s3 = inlined_call_operand.vmem [shape: f32[1,96], index: 3, kind: input, shape index: {}]   ;;  %s1157_s2 = inlined_call_operand.vmem [shape: f32[1,96], index: 2, kind: input, shape index: {}]   ;;  %s1158_s4 = inlined_call_operand.vmem [shape: f32[128,32], index: 4, kind: output, shape index: {}]  }
   0x1   :  { %v665_v0 = vld [vmem:[%s1154_s1] sm:$0xff]   ;;  %v666_v1 = vld [vmem:[%s1154_s1 + $0x8] sm:$0xff]   ;;  %v20_v7 = vld [vmem:[%s1155_s0 + $0x10] sm:$0xff] }
   0x2   :  { %639 = vmatprep.subr.bf16.mxu0 %v665_v0  ;;  %659 = vmatprep.subr.bf16.mxu1 %v665_v0  ;;  %v18_v2 = vld [vmem:[%s1155_s0] sm:$0xff]  ;;  %v19_v3 = vld [vmem:[%s1155_s0 + $0x8] sm:$0xff]  ;;  %v21_v8 = vld [vmem:[%s1155_s0 + $0x18] sm:$0xff] }
   0x3   :  { %v26_v4 = vld [vmem:[%s1155_s0 + $0x40] sm:$0xff]  ;;  %640 = vmatpush3.bf16.msra.mxu0 %v665_v0  ;;  %661 = vmatpush3.bf16.msra.mxu1 %v665_v0  ;;  %v34_v5 = vpack.c.bf16 %v19_v3, %v18_v2  ;;  %v27_v6 = vld [vmem:[%s1155_s0 + $0x48] sm:$0xff]  ;;  %v28_v10 = vld [vmem:[%s1155_s0 + $0x50] sm:$0xff]  ;;  %v35_v16 = vpack.c.bf16 %v21_v8, %v20_v7 }
   0x4   :  { %641 = vmatprep.subr.bf16.mxu0 %v666_v1  ;;  %660 = vmatprep.subr.bf16.mxu1 %v666_v1  ;;  %v38_v9 = vpack.c.bf16 %v27_v6, %v26_v4  ;;  %v29_v11 = vld [vmem:[%s1155_s0 + $0x58] sm:$0xff]  ;;  %v22_v12 = vld [vmem:[%s1155_s0 + $0x20] sm:$0xff]  ;;  %v23_v13 = vld [vmem:[%s1155_s0 + $0x28] sm:$0xff] }
   0x5   :  { %643 = vmatprep.mubr.msk.bf16.mxu0 %vm65_vm0, %v34_v5  ;;  %v30_v14 = vld [vmem:[%s1155_s0 + $0x60] sm:$0xff]  ;;  %v31_v15 = vld [vmem:[%s1155_s0 + $0x68] sm:$0xff]  ;;  %v39_v17 = vpack.c.bf16 %v29_v11, %v28_v10  ;;  %v36_v18 = vpack.c.bf16 %v23_v13, %v22_v12  ;;  %v24_v21 = vld [vmem:[%s1155_s0 + $0x30] sm:$0xff] }
   0x6   :  { %651 = vmatprep.mubr.msk.bf16.mxu1 %vm65_vm0, %v38_v9  ;;  %v40_v19 = vpack.c.bf16 %v31_v15, %v30_v14  ;;  %v837_v20 = vld [vmem:[%s1156_s3] ss:$0 sm:$0xff]  ;;  %v25_v22 = vld [vmem:[%s1155_s0 + $0x38] sm:$0xff]  ;;  %v32_v23 = vld [vmem:[%s1155_s0 + $0x70] sm:$0xff] }
   0x7   :  { %642 = vmatpush3.bf16.msra.mxu0 %v666_v1  ;;  %662 = vmatpush3.bf16.msra.mxu1 %v666_v1  ;;  %v33_v24 = vld [vmem:[%s1155_s0 + $0x78] sm:$0xff]  ;;  %v37_v25 = vpack.c.bf16 %v25_v22, %v24_v21  ;;  %v862_v27 = vld [vmem:[%s1157_s2] ss:$0 sm:$0xff]  ;;  %s764_s0 = smov 96  }
   0x8   :  { %306 = vrot.lane.b32.xlu0 %v837_v20, %s763_s18  ;;  %v41_v26 = vpack.c.bf16 %v33_v24, %v32_v23 }
   0xa   :  { %644 = vmatmul.mubr.msk.bf16.vlgmr.msra.gmra.mrb[0].mxu0 %vm65_vm0, %v35_v16  ;;  %652 = vmatmul.mubr.msk.bf16.vlgmr.msra.gmra.mrb[0].mxu1 %vm65_vm0, %v39_v17 }
   0xb   :  { %647 = vmatprep.mubr.msk.bf16.mxu0 %vm65_vm0, %v36_v18  ;;  %655 = vmatprep.mubr.msk.bf16.mxu1 %vm65_vm0, %v40_v19 }
  0x12   :  { %648 = vmatmul.mubr.msk.bf16.gmra.mrb[4].mxu0 %vm65_vm0, %v37_v25  ;;  %656 = vmatmul.mubr.msk.bf16.gmra.mrb[4].mxu1 %vm65_vm0, %v41_v26 }
  0xdd   :  { %v645_v28 = vpop.f32.mrb[0].mxu0  ;;  %v653_v29 = vpop.f32.mrb[0].mxu1 }
  0xde   :  { %v865_v30 = vadd.f32 %v645_v28, %v862_v27  ;;  %v868_v31 = vadd.f32 %v653_v29, %v862_v27  ;;  %v124_v32 = vpop.f32.mrb[1].mxu0  ;;  %v156_v33 = vpop.f32.mrb[1].mxu1 }
  0xdf   :  { %v871_v34 = vadd.f32 %v862_v27, %v124_v32  ;;  %v874_v35 = vadd.f32 %v862_v27, %v156_v33  ;;  %v646_v36 = vpop.f32.mrb[2].mxu0  ;;  %v654_v37 = vpop.f32.mrb[2].mxu1 }
  0xe0   :  { %v196_v38 = vadd.f32 %v837_v20, %v865_v30  ;;  %v204_v39 = vadd.f32 %v837_v20, %v868_v31  ;;  %v881_v40 = vadd.f32 %v646_v36, %v862_v27  ;;  %v884_v41 = vadd.f32 %v654_v37, %v862_v27  ;;  %v127_v42 = vpop.f32.mrb[3].mxu0  ;;  %v159_v43 = vpop.f32.mrb[3].mxu1 }
  0xe1   :  { %v194_v44 = vadd.f32 %v837_v20, %v871_v34  ;;  %v202_v45 = vadd.f32 %v837_v20, %v874_v35  ;;  %v891_v46 = vadd.f32 %v862_v27, %v127_v42  ;;  %v894_v47 = vadd.f32 %v862_v27, %v159_v43 }
  0xe2   :  { %v615_v48 = vmul.f32 -1.442695, %v196_v38  ;;  %v623_v49 = vmul.f32 -1.442695, %v204_v39  ;;  %v197_v50 = vadd.f32 %v837_v20, %v881_v40  ;;  %v205_v51 = vadd.f32 %v837_v20, %v884_v41 }
  0xe3   :  { %v613_v52 = vmul.f32 -1.442695, %v194_v44  ;;  %v621_v53 = vmul.f32 -1.442695, %v202_v45  ;;  %v195_v54 = vadd.f32 %v837_v20, %v891_v46  ;;  %v203_v55 = vadd.f32 %v837_v20, %v894_v47 }
  0xe4   :  { %667 = vpow2.f32 %v615_v48  ;;  %v616_v56 = vmul.f32 -1.442695, %v197_v50  ;;  %v624_v57 = vmul.f32 -1.442695, %v205_v51 }
  0xe5   :  { %669 = vpow2.f32 %v623_v49  ;;  %v649_v58 = vpop.f32.mrb[4].mxu0  ;;  %v657_v59 = vpop.f32.mrb[4].mxu1  ;;  %v614_v60 = vmul.f32 -1.442695, %v195_v54  ;;  %v622_v0 = vmul.f32 -1.442695, %v203_v55 }
  0xe6   :  { %671 = vpow2.f32 %v613_v52  ;;  %v905_v61 = vadd.f32 %v649_v58, %v862_v27  ;;  %v140_v62 = vpop.f32.mrb[5].mxu0  ;;  %v172_v63 = vpop.f32.mrb[5].mxu1  ;;  %v923_v15 = vadd.f32 %v657_v59, %v862_v27 }
  0xe7   :  { %673 = vpow2.f32 %v621_v53  ;;  %v908_v1 = vadd.f32 %v862_v27, %v140_v62  ;;  %v650_v2 = vpop.f32.mrb[6].mxu0  ;;  %v658_v3 = vpop.f32.mrb[6].mxu1  ;;  %v918_v10 = vadd.f32 %v862_v27, %v172_v63 }
  0xe8   :  { %675 = vpow2.f32 %v616_v56  ;;  %v200_v4 = vadd.f32 %v837_v20, %v905_v61  ;;  %v913_v5 = vadd.f32 %v650_v2, %v862_v27  ;;  %v143_v6 = vpop.f32.mrb[7].mxu0  ;;  %v175_v7 = vpop.f32.mrb[7].mxu1  ;;  %v208_v25 = vadd.f32 %v837_v20, %v923_v15 }
  0xe9   :  { %677 = vpow2.f32 %v624_v57  ;;  %v198_v8 = vadd.f32 %v837_v20, %v908_v1  ;;  %v206_v16 = vadd.f32 %v837_v20, %v918_v10  ;;  %v930_v33 = vadd.f32 %v862_v27, %v143_v6 }
  0xea   :  { %679 = vpow2.f32 %v614_v60  ;;  %v619_v9 = vmul.f32 -1.442695, %v200_v4  ;;  %v201_v11 = vadd.f32 %v837_v20, %v913_v5  ;;  %v933_v37 = vadd.f32 %v862_v27, %v175_v7 }
  0xeb   :  { %681 = vpow2.f32 %v622_v0  ;;  %v617_v12 = vmul.f32 -1.442695, %v198_v8  ;;  %v625_v26 = vmul.f32 -1.442695, %v206_v16  ;;  %v936_v42 = vadd.f32 %v658_v3, %v862_v27  ;;  %v944_v27 = vpop.permute.xlu0 %306 }
  0xec   :  { %683 = vpow2.f32 %v619_v9  ;;  %v620_v13 = vmul.f32 -1.442695, %v201_v11  ;;  %v627_v44 = vmul.f32 -1.442695, %v208_v25  ;;  %v199_v48 = vadd.f32 %v837_v20, %v930_v33 }
  0xed   :  { %685 = vpow2.f32 %v617_v12  ;;  %v207_v50 = vadd.f32 %v837_v20, %v933_v37  ;;  %v209_v53 = vadd.f32 %v837_v20, %v936_v42 }
  0xee   :  { %v668_v14 = vpop.eup %667  ;;  %687 = vpow2.f32 %v620_v13  ;;  %v618_v57 = vmul.f32 -1.442695, %v199_v48 }
  0xef   :  { %v670_v17 = vpop.eup %669  ;;  %v260_v18 = vadd.f32 1.0, %v668_v14  ;;  %v626_v59 = vmul.f32 -1.442695, %v207_v50  ;;  %v628_v20 = vmul.f32 -1.442695, %v209_v53 }
  0xf0   :  { %v672_v19 = vpop.eup %671  ;;  %v268_v21 = vadd.f32 1.0, %v670_v17 }
  0xf1   :  { %v674_v22 = vpop.eup %673  ;;  %689 = vrcp.f32 %v260_v18  ;;  %v258_v23 = vadd.f32 1.0, %v672_v19 }
  0xf2   :  { %v676_v24 = vpop.eup %675  ;;  %691 = vrcp.f32 %v268_v21  ;;  %v266_v29 = vadd.f32 1.0, %v674_v22 }
  0xf3   :  { %v678_v28 = vpop.eup %677  ;;  %693 = vrcp.f32 %v258_v23  ;;  %v261_v32 = vadd.f32 1.0, %v676_v24 }
  0xf4   :  { %v680_v36 = vpop.eup %679  ;;  %v269_v39 = vadd.f32 1.0, %v678_v28 }
  0xf5   :  { %v682_v38 = vpop.eup %681  ;;  %695 = vrcp.f32 %v261_v32  ;;  %v259_v45 = vadd.f32 1.0, %v680_v36 }
  0xf6   :  { %v684_v43 = vpop.eup %683  ;;  %697 = vpow2.f32 %v625_v26  ;;  %v267_v49 = vadd.f32 1.0, %v682_v38 }
  0xf7   :  { %699 = vrcp.f32 %v266_v29  ;;  %v686_v51 = vpop.eup %685  ;;  %v264_v52 = vadd.f32 1.0, %v684_v43 }
  0xf8   :  { %701 = vrcp.f32 %v269_v39  ;;  %v688_v54 = vpop.eup %687  ;;  %v262_v2 = vadd.f32 1.0, %v686_v51 }
  0xf9   :  { %703 = vpow2.f32 %v627_v44  ;;  %v265_v56 = vadd.f32 1.0, %v688_v54 }
  0xfa   :  { %705 = vrcp.f32 %v259_v45 }
  0xfb   :  { %v946_v55 = vpop.eup %689  ;;  %707 = vrcp.f32 %v267_v49 }
  0xfc   :  { %v948_v58 = vpop.eup %691  ;;  %v311_v60 = vmul.f32 %v946_v55, %v944_v27  ;;  %709 = vrcp.f32 %v264_v52 }
  0xfd   :  { %v952_v62 = vpop.eup %693  ;;  %711 = vrcp.f32 %v265_v56  ;;  %v319_v4 = vmul.f32 %v948_v58, %v944_v27 }
  0xfe   :  { %345 = vrot.lane.b32.xlu1 %v311_v60, %s763_s18  ;;  %v309_v63 = vmul.f32 %v952_v62, %v944_v27  ;;  %713 = vpow2.f32 %v618_v57 }
  0xff   :  { %v957_v0 = vpop.eup %695  ;;  %715 = vpow2.f32 %v626_v59 }
 0x100   :  { %v698_v3 = vpop.eup %697  ;;  %341 = vrot.lane.b32.xlu0 %v309_v63, %s763_s18  ;;  %717 = vpow2.f32 %v628_v20  ;;  %v312_v7 = vmul.f32 %v957_v0, %v944_v27 }
 0x101   :  { %v962_v6 = vpop.eup %699  ;;  %719 = vrcp.f32 %v262_v2  ;;  %v270_v9 = vadd.f32 1.0, %v698_v3 }
 0x102   :  { %361 = vrot.lane.b32.xlu1 %v319_v4, %s763_s18  ;;  %v967_v8 = vpop.eup %701  ;;  %v317_v12 = vmul.f32 %v962_v6, %v944_v27 }
 0x103   :  { %v704_v11 = vpop.eup %703  ;;  %v320_v16 = vmul.f32 %v967_v8, %v944_v27  ;;  %721 = vrcp.f32 %v270_v9 }
 0x104   :  { %347 = vrot.lane.b32.xlu0 %v312_v7, %s763_s18  ;;  %v972_v13 = vpop.eup %705  ;;  %v272_v18 = vadd.f32 1.0, %v704_v11 }
 0x105   :  { %v974_v14 = vpop.eup %707  ;;  %v310_v21 = vmul.f32 %v972_v13, %v944_v27 }
 0x106   :  { %357 = vrot.lane.b32.xlu1 %v317_v12, %s763_s18  ;;  %v979_v17 = vpop.eup %709  ;;  %v318_v25 = vmul.f32 %v974_v14, %v944_v27  ;;  %723 = vrcp.f32 %v272_v18 }
 0x107   :  { %v981_v19 = vpop.eup %711  ;;  %v315_v29 = vmul.f32 %v979_v17, %v944_v27 }
 0x108   :  { %363 = vrot.lane.b32.xlu0 %v320_v16, %s763_s18  ;;  %v714_v22 = vpop.eup %713  ;;  %v316_v38 = vmul.f32 %v981_v19, %v944_v27 }
 0x109   :  { %v716_v23 = vpop.eup %715  ;;  %v263_v24 = vadd.f32 1.0, %v714_v22 }
 0x10a   :  { %343 = vrot.lane.b32.xlu1 %v310_v21, %s763_s18  ;;  %v718_v26 = vpop.eup %717  ;;  %v271_v28 = vadd.f32 1.0, %v716_v23 }
 0x10b   :  { %725 = vrcp.f32 %v263_v24  ;;  %v992_v32 = vpop.eup %719  ;;  %v273_v36 = vadd.f32 1.0, %v718_v26 }
 0x10c   :  { %359 = vrot.lane.b32.xlu0 %v318_v25, %s763_s18  ;;  %727 = vrcp.f32 %v271_v28  ;;  %v313_v39 = vmul.f32 %v992_v32, %v944_v27 }
 0x10d   :  { %v1000_v43 = vpop.eup %721  ;;  %729 = vrcp.f32 %v273_v36 }
 0x10e   :  { %353 = vrot.lane.b32.xlu1 %v315_v29, %s763_s18  ;;  %v321_v44 = vmul.f32 %v1000_v43, %v944_v27 }
 0x110   :  { %355 = vrot.lane.b32.xlu0 %v316_v38, %s763_s18  ;;  %v1005_v45 = vpop.eup %723 }
 0x111   :  { %v323_v51 = vmul.f32 %v1005_v45, %v944_v27 }
 0x112   :  { %349 = vrot.lane.b32.xlu1 %v313_v39, %s763_s18 }
 0x115   :  { %v1007_v48 = vpop.eup %725 }
 0x116   :  { %365 = vrot.lane.b32.xlu1 %v321_v44, %s763_s18  ;;  %v314_v49 = vmul.f32 %v1007_v48, %v944_v27  ;;  %v1012_v50 = vpop.eup %727 }
 0x117   :  { %v322_v52 = vmul.f32 %v1012_v50, %v944_v27  ;;  %v1020_v53 = vpop.eup %729 }
 0x118   :  { %351 = vrot.lane.b32.xlu0 %v314_v49, %s763_s18  ;;  %v324_v54 = vmul.f32 %v1020_v53, %v944_v27 }
 0x11a   :  { %369 = vrot.lane.b32.xlu1 %v323_v51, %s763_s18 }
 0x11c   :  { %367 = vrot.lane.b32.xlu0 %v322_v52, %s763_s18 }
 0x120   :  { %371 = vrot.lane.b32.xlu0 %v324_v54, %s763_s18 }
 0x170   :  { %v346_v56 = vpop.permute.xlu1 %345 }
 0x171   :  { %v391_v57 = vadd.f32 %v346_v56, %v865_v30 }
 0x172   :  { %v342_v59 = vpop.permute.xlu0 %341 }
 0x173   :  { %731 = vtanh.f32 %v391_v57  ;;  %v389_v2 = vadd.f32 %v342_v59, %v871_v34 }
 0x174   :  { %v362_v60 = vpop.permute.xlu1 %361 }
 0x175   :  { %v399_v20 = vadd.f32 %v362_v60, %v868_v31  ;;  %v431_v60 = vsub.f32 1.0, %v948_v58  ;;  %v429_v58 = vsub.f32 1.0, %v962_v6 }
 0x176   :  { %v348_v63 = vpop.permute.xlu0 %347 }
 0x177   :  { %733 = vtanh.f32 %v399_v20  ;;  %v392_v3 = vadd.f32 %v348_v63, %v881_v40 }
 0x178   :  { %v358_v4 = vpop.permute.xlu1 %357 }
 0x179   :  { %735 = vtanh.f32 %v392_v3  ;;  %v397_v27 = vadd.f32 %v358_v4, %v874_v35 }
 0x17a   :  { %v364_v7 = vpop.permute.xlu0 %363  ;;  %737 = vtanh.f32 %v389_v2  ;;  %v424_v2 = vsub.f32 1.0, %v957_v0 }
 0x17b   :  { %v400_v9 = vadd.f32 %v364_v7, %v884_v41 }
 0x17c   :  { %v344_v30 = vpop.permute.xlu1 %343 }
 0x17d   :  { %v732_v11 = vpop.eup %731  ;;  %739 = vtanh.f32 %v400_v9  ;;  %v390_v12 = vadd.f32 %v344_v30, %v891_v46 }
 0x17e   :  { %741 = vtanh.f32 %v397_v27  ;;  %v360_v31 = vpop.permute.xlu0 %359  ;;  %457 = vrot.lane.b32.xlu1 %v732_v11, %s764_s0  ;;  %v421_v27 = vsub.f32 1.0, %v952_v62 }
 0x17f   :  { %743 = vtanh.f32 %v390_v12  ;;  %v398_v16 = vadd.f32 %v360_v31, %v894_v47  ;;  %v422_v31 = vsub.f32 1.0, %v972_v13 }
 0x180   :  { %v354_v34 = vpop.permute.xlu1 %353 }
 0x181   :  { %v734_v40 = vpop.eup %733  ;;  %v395_v35 = vadd.f32 %v354_v34, %v905_v61 }
 0x182   :  { %v356_v18 = vpop.permute.xlu0 %355  ;;  %473 = vrot.lane.b32.xlu1 %v734_v40, %s764_s0  ;;  %v427_v40 = vsub.f32 1.0, %v979_v17 }
 0x183   :  { %v736_v41 = vpop.eup %735  ;;  %745 = vtanh.f32 %v395_v35  ;;  %v396_v22 = vadd.f32 %v356_v18, %v913_v5  ;;  %v430_v35 = vsub.f32 1.0, %v974_v14 }
 0x184   :  { %459 = vrot.lane.b32.xlu0 %v736_v41, %s764_s0  ;;  %v350_v46 = vpop.permute.xlu1 %349  ;;  %v738_v21 = vpop.eup %737  ;;  %747 = vtanh.f32 %v398_v16  ;;  %v425_v41 = vsub.f32 1.0, %v992_v32  ;;  %v435_v32 = vsub.f32 1.0, %v1005_v45 }
 0x185   :  { %v393_v23 = vadd.f32 %v350_v46, %v908_v1 }
 0x186   :  { %453 = vrot.lane.b32.xlu1 %v738_v21, %s764_s0  ;;  %v428_v21 = vsub.f32 1.0, %v981_v19 }
 0x187   :  { %v740_v24 = vpop.eup %739  ;;  %749 = vtanh.f32 %v393_v23  ;;  %v433_v23 = vsub.f32 1.0, %v1000_v43 }
 0x188   :  { %v742_v47 = vpop.eup %741  ;;  %475 = vrot.lane.b32.xlu0 %v740_v24, %s764_s0  ;;  %v366_v61 = vpop.permute.xlu1 %365  ;;  %751 = vtanh.f32 %v396_v22 }
 0x189   :  { %v744_v25 = vpop.eup %743  ;;  %v401_v26 = vadd.f32 %v366_v61, %v918_v10 }
 0x18a   :  { %469 = vrot.lane.b32.xlu1 %v742_v47, %s764_s0  ;;  %v352_v28 = vpop.permute.xlu0 %351  ;;  %v426_v47 = vsub.f32 1.0, %v1007_v48  ;;  %v436_v48 = vsub.f32 1.0, %v1020_v53 }
 0x18b   :  { %753 = vtanh.f32 %v401_v26  ;;  %v394_v5 = vadd.f32 %v352_v28, %v930_v33  ;;  %v434_v28 = vsub.f32 1.0, %v1012_v50 }
 0x18c   :  { %455 = vrot.lane.b32.xlu0 %v744_v25, %s764_s0  ;;  %v370_v1 = vpop.permute.xlu1 %369 }
 0x18d   :  { %v746_v29 = vpop.eup %745  ;;  %v403_v36 = vadd.f32 %v370_v1, %v923_v15  ;;  %755 = vtanh.f32 %v394_v5 }
 0x18e   :  { %465 = vrot.lane.b32.xlu1 %v746_v29, %s764_s0  ;;  %v748_v38 = vpop.eup %747  ;;  %v368_v39 = vpop.permute.xlu0 %367 }
 0x18f   :  { %757 = vtanh.f32 %v403_v36  ;;  %v402_v10 = vadd.f32 %v368_v39, %v933_v37 }
 0x190   :  { %471 = vrot.lane.b32.xlu0 %v748_v38, %s764_s0 }
 0x191   :  { %v750_v44 = vpop.eup %749  ;;  %759 = vtanh.f32 %v402_v10 }
 0x192   :  { %461 = vrot.lane.b32.xlu1 %v750_v44, %s764_s0  ;;  %v752_v33 = vpop.eup %751  ;;  %v372_v49 = vpop.permute.xlu0 %371 }
 0x193   :  { %v404_v51 = vadd.f32 %v372_v49, %v936_v42  ;;  %v423_v42 = vsub.f32 1.0, %v946_v55  ;;  %v432_v55 = vsub.f32 1.0, %v967_v8 }
 0x194   :  { %467 = vrot.lane.b32.xlu0 %v752_v33, %s764_s0 }
 0x195   :  { %v754_v15 = vpop.eup %753  ;;  %761 = vtanh.f32 %v404_v51 }
 0x196   :  { %477 = vrot.lane.b32.xlu1 %v754_v15, %s764_s0 }
 0x197   :  { %v756_v52 = vpop.eup %755 }
 0x198   :  { %463 = vrot.lane.b32.xlu0 %v756_v52, %s764_s0 }
 0x199   :  { %v758_v54 = vpop.eup %757 }
 0x19a   :  { %481 = vrot.lane.b32.xlu1 %v758_v54, %s764_s0 }
 0x19b   :  { %v760_v37 = vpop.eup %759 }
 0x19c   :  { %479 = vrot.lane.b32.xlu0 %v760_v37, %s764_s0 }
 0x19f   :  { %v762_v56 = vpop.eup %761 }
 0x1a0   :  { %483 = vrot.lane.b32.xlu0 %v762_v56, %s764_s0 }
 0x1f0   :  { %v458_v57 = vpop.permute.xlu1 %457 }
 0x1f1   :  { %v503_v59 = vmul.f32 %v458_v57, %v423_v42 }
 0x1f3   :  { %537 = vrot.lane.b32.xlu1 %v503_v59, %s764_s0 }
 0x1f4   :  { %v474_v20 = vpop.permute.xlu1 %473 }
 0x1f5   :  { %v511_v63 = vmul.f32 %v474_v20, %v431_v60 }
 0x1f6   :  { %v460_v3 = vpop.permute.xlu0 %459 }
 0x1f7   :  { %v504_v4 = vmul.f32 %v460_v3, %v424_v2  ;;  %553 = vrot.lane.b32.xlu1 %v511_v63, %s764_s0 }
 0x1f8   :  { %v454_v7 = vpop.permute.xlu1 %453 }
 0x1f9   :  { %v501_v9 = vmul.f32 %v454_v7, %v421_v27  ;;  %539 = vrot.lane.b32.xlu0 %v504_v4, %s764_s0 }
 0x1fa   :  { %v476_v30 = vpop.permute.xlu0 %475 }
 0x1fb   :  { %v512_v11 = vmul.f32 %v476_v30, %v432_v55  ;;  %533 = vrot.lane.b32.xlu1 %v501_v9, %s764_s0 }
 0x1fc   :  { %v470_v12 = vpop.permute.xlu1 %469 }
 0x1fd   :  { %v509_v0 = vmul.f32 %v470_v12, %v429_v58  ;;  %555 = vrot.lane.b32.xlu0 %v512_v11, %s764_s0 }
 0x1fe   :  { %v456_v34 = vpop.permute.xlu0 %455 }
 0x1ff   :  { %v502_v62 = vmul.f32 %v456_v34, %v422_v31  ;;  %549 = vrot.lane.b32.xlu1 %v509_v0, %s764_s0 }
 0x200   :  { %v466_v16 = vpop.permute.xlu1 %465 }
 0x201   :  { %v507_v8 = vmul.f32 %v466_v16, %v427_v40  ;;  %535 = vrot.lane.b32.xlu0 %v502_v62, %s764_s0 }
 0x202   :  { %v472_v18 = vpop.permute.xlu0 %471 }
 0x203   :  { %v510_v6 = vmul.f32 %v472_v18, %v430_v35  ;;  %545 = vrot.lane.b32.xlu1 %v507_v8, %s764_s0 }
 0x204   :  { %v462_v46 = vpop.permute.xlu1 %461 }
 0x205   :  { %v505_v13 = vmul.f32 %v462_v46, %v425_v41  ;;  %551 = vrot.lane.b32.xlu0 %v510_v6, %s764_s0 }
 0x206   :  { %v468_v22 = vpop.permute.xlu0 %467 }
 0x207   :  { %v508_v17 = vmul.f32 %v468_v22, %v428_v21  ;;  %541 = vrot.lane.b32.xlu1 %v505_v13, %s764_s0 }
 0x208   :  { %v478_v24 = vpop.permute.xlu1 %477 }
 0x209   :  { %v513_v14 = vmul.f32 %v478_v24, %v433_v23  ;;  %547 = vrot.lane.b32.xlu0 %v508_v17, %s764_s0 }
 0x20a   :  { %v464_v61 = vpop.permute.xlu0 %463 }
 0x20b   :  { %557 = vrot.lane.b32.xlu1 %v513_v14, %s764_s0  ;;  %v506_v25 = vmul.f32 %v464_v61, %v426_v47 }
 0x20c   :  { %v482_v26 = vpop.permute.xlu1 %481 }
 0x20d   :  { %v515_v19 = vmul.f32 %v482_v26, %v435_v32  ;;  %543 = vrot.lane.b32.xlu0 %v506_v25, %s764_s0 }
 0x20e   :  { %v480_v5 = vpop.permute.xlu0 %479 }
 0x20f   :  { %561 = vrot.lane.b32.xlu1 %v515_v19, %s764_s0  ;;  %v514_v43 = vmul.f32 %v480_v5, %v434_v28 }
 0x211   :  { %559 = vrot.lane.b32.xlu0 %v514_v43, %s764_s0 }
 0x212   :  { %v484_v1 = vpop.permute.xlu0 %483 }
 0x213   :  { %v516_v29 = vmul.f32 %v484_v1, %v436_v48 }
 0x215   :  { %563 = vrot.lane.b32.xlu0 %v516_v29, %s764_s0 }
 0x265   :  { %v538_v45 = vpop.permute.xlu1 %537 }
 0x266   :  { %583 = vst.msk [vmem:[%s1158_s4 + $0x10] sm:$0xff] %vm65_vm0, %v538_v45 }
 0x269   :  { %v554_v36 = vpop.permute.xlu1 %553 }
 0x26a   :  { %591 = vst.msk [vmem:[%s1158_s4 + $0x50] sm:$0xff] %vm65_vm0, %v554_v36 }
 0x26b   :  { %v540_v50 = vpop.permute.xlu0 %539 }
 0x26c   :  { %584 = vst.msk [vmem:[%s1158_s4 + $0x18] sm:$0xff] %vm65_vm0, %v540_v50 }
 0x26d   :  { %v534_v53 = vpop.permute.xlu1 %533 }
 0x26e   :  { %581 = vst.msk [vmem:[%s1158_s4] sm:$0xff] %vm65_vm0, %v534_v53 }
 0x26f   :  { %v556_v38 = vpop.permute.xlu0 %555 }
 0x270   :  { %592 = vst.msk [vmem:[%s1158_s4 + $0x58] sm:$0xff] %vm65_vm0, %v556_v38 }
 0x271   :  { %v550_v39 = vpop.permute.xlu1 %549 }
 0x272   :  { %589 = vst.msk [vmem:[%s1158_s4 + $0x40] sm:$0xff] %vm65_vm0, %v550_v39 }
 0x273   :  { %v536_v10 = vpop.permute.xlu0 %535 }
 0x274   :  { %582 = vst.msk [vmem:[%s1158_s4 + $0x8] sm:$0xff] %vm65_vm0, %v536_v10 }
 0x275   :  { %v546_v44 = vpop.permute.xlu1 %545 }
 0x276   :  { %587 = vst.msk [vmem:[%s1158_s4 + $0x30] sm:$0xff] %vm65_vm0, %v546_v44 }
 0x277   :  { %v552_v33 = vpop.permute.xlu0 %551 }
 0x278   :  { %590 = vst.msk [vmem:[%s1158_s4 + $0x48] sm:$0xff] %vm65_vm0, %v552_v33 }
 0x279   :  { %v542_v49 = vpop.permute.xlu1 %541 }
 0x27a   :  { %585 = vst.msk [vmem:[%s1158_s4 + $0x20] sm:$0xff] %vm65_vm0, %v542_v49 }
 0x27b   :  { %v548_v51 = vpop.permute.xlu0 %547 }
 0x27c   :  { %588 = vst.msk [vmem:[%s1158_s4 + $0x38] sm:$0xff] %vm65_vm0, %v548_v51 }
 0x27d   :  { %v558_v15 = vpop.permute.xlu1 %557 }
 0x27e   :  { %593 = vst.msk [vmem:[%s1158_s4 + $0x60] sm:$0xff] %vm65_vm0, %v558_v15 }
 0x27f   :  { %v544_v52 = vpop.permute.xlu0 %543 }
 0x280   :  { %586 = vst.msk [vmem:[%s1158_s4 + $0x28] sm:$0xff] %vm65_vm0, %v544_v52 }
 0x281   :  { %v562_v54 = vpop.permute.xlu1 %561 }
 0x282   :  { %595 = vst.msk [vmem:[%s1158_s4 + $0x70] sm:$0xff] %vm65_vm0, %v562_v54 }
 0x283   :  { %v560_v37 = vpop.permute.xlu0 %559 }
 0x284   :  { %594 = vst.msk [vmem:[%s1158_s4 + $0x68] sm:$0xff] %vm65_vm0, %v560_v37 }
 0x287   :  { %v564_v56 = vpop.permute.xlu0 %563 }
 0x288   :  { %596 = vst.msk [vmem:[%s1158_s4 + $0x78] sm:$0xff] %vm65_vm0, %v564_v56 }

</bundles_post_ra>
